<compile_context>
chip_gen: v6e
topology: v6e:2x2x1
jax: 0.10.0
libtpu: 0.0.40
codegen_flags: <defaults>
</compile_context>

<pallas_src>
import functools
import math

import jax
import jax.numpy as jnp
import numpy as np
from jax.experimental import pallas as pl
from jax.experimental.pallas import tpu as pltpu


def _round_up(v, m):
    return ((v + m - 1) // m) * m


def _pick_edge_tile(n_nodes, n_edges, requested, onehot_budget_bytes=4 << 20):
    """Edge-tile size: lane-dense (multiple of 128) and small enough that the
    cached int32 node-iota scratch + two bf16 one-hot temporaries
    (~8 * N * Et bytes) stay within `onehot_budget_bytes` (v5e/v7x friendly)."""
    cap = max(128, (onehot_budget_bytes // max(8 * n_nodes, 1)) // 128 * 128)
    et = min(requested, cap, _round_up(max(n_edges, 1), 128))
    return max(128, (et // 128) * 128)


# ---------------------------------------------------------------------------
# Kernel 1: partial neighbor aggregation of the GraphConv message projection.
#   out[c, n] = sum_{edges e in slice c} hmsg[src(e)] * [tgt(e) == n]
# ---------------------------------------------------------------------------
def _graphconv_agg_kernel(ei_ref, hmsg_ref, out_ref, iota_ref):
    # ei_ref:   [2, Et]  int32 edge tile (row 0 = src, row 1 = tgt; pads = N).
    # hmsg_ref: [1, N]   bf16 per-node message projection x @ W_msg (resident).
    # out_ref:  [1, N]   f32 partial aggregate for parallel slice c (accumulator).
    # iota_ref: [N, Et]  int32 cached node-id iota (built once per slice).
    t = pl.program_id(1)

    @pl.when(t == 0)
    def _init():
        iota_ref[...] = jax.lax.broadcasted_iota(jnp.int32, iota_ref.shape, 0)
        out_ref[...] = jnp.zeros_like(out_ref)

    node_iota = iota_ref[...]                                       # [N, Et]
    # One-hots are exact in bf16; padded edges (id == N) give all-zero columns.
    src_oh = (node_iota == ei_ref[0:1, :]).astype(jnp.bfloat16)     # [N, Et]
    tgt_oh = (node_iota == ei_ref[1:2, :]).astype(jnp.bfloat16)     # [N, Et]

    # Gather per-edge messages: h_src[0, e] = hmsg[src[e]]   ([1,N] @ [N,Et]).
    h_src = jnp.dot(hmsg_ref[...], src_oh,
                    preferred_element_type=jnp.float32)             # [1, Et]
    # Scatter-add onto targets, lane-dense along the node axis:
    #   out[0, n] += sum_e h_src[0, e] * tgt_oh[n, e]
    # (h_src values are bf16-representable, so the cast back is exact).
    out_ref[...] += jax.lax.dot_general(
        h_src.astype(jnp.bfloat16), tgt_oh,
        dimension_numbers=(((1,), (1,)), ((), ())),
        preferred_element_type=jnp.float32)                         # [1, N]


# ---------------------------------------------------------------------------
# Kernel 2a: X' = (X * score)[perm] * multiplier via scalar-prefetch row gather.
# ---------------------------------------------------------------------------
def _gather_scale_kernel(perm_ref, x_ref, s_ref, o_ref, *, multiplier):
    del perm_ref  # only consumed by the index maps (scalar prefetch)
    o_ref[...] = x_ref[...] * (s_ref[0, 0] * multiplier)


# ---------------------------------------------------------------------------
# Kernel 2b: filter_adj — keep edges with both endpoints in perm, relabel.
# ---------------------------------------------------------------------------
def _filter_adj_kernel(perm_ref, ei_ref, out_ref):
    # perm_ref: [K8, 1] int32 (pad rows = -1);  ei_ref / out_ref: [2, Et] int32.
    src = ei_ref[0:1, :]                                            # [1, Et]
    tgt = ei_ref[1:2, :]
    perm = perm_ref[...]                                            # [K8, 1]
    kio = jax.lax.broadcasted_iota(jnp.int32, (perm.shape[0], src.shape[1]), 0)
    # Max-encoding relabel (perm entries are unique): r = pos_in_perm + 1, 0 if absent.
    r_src = jnp.max(jnp.where(perm == src, kio + 1, 0), axis=0, keepdims=True)
    r_tgt = jnp.max(jnp.where(perm == tgt, kio + 1, 0), axis=0, keepdims=True)
    keep = jnp.logical_and(r_src > 0, r_tgt > 0)                    # [1, Et]
    out_ref[...] = jnp.concatenate(
        [jnp.where(keep, r_src - 1, -1), jnp.where(keep, r_tgt - 1, -1)], axis=0)


# ---------------------------------------------------------------------------
# Wrapper
# ---------------------------------------------------------------------------
def sag_pooling(x, edge_index, w_msg, w_root, b_root, *,
                ratio=0.5, multiplier=1.0, edge_tile=1024):
    """SAGPooling forward (min_score=None, tanh nonlinearity, single graph).

    Returns (x_out [K,D], new_edge_index [2,E] relabeled with -1 where dropped,
             edge_mask [E] bool, batch_perm [K], perm [K], score_perm [K],
             score [N] full node scores for diagnostics).
    """
    # TODO(synk): min_score/softmax path, multi-graph `batch` top-k and edge_attr
    # filtering are not implemented (only the module's default configuration).
    N, D = x.shape
    E = edge_index.shape[1]
    k = int(math.ceil(ratio * N))

    x = jnp.asarray(x, jnp.float32)
    w_msg = jnp.asarray(w_msg, jnp.float32).reshape(D, 1)
    w_root = jnp.asarray(w_root, jnp.float32).reshape(D, 1)
    b = jnp.asarray(b_root, jnp.float32).reshape(())

    # Hoisted per-node projections: kernel 1 never sees x or W (review fix #1).
    hmsg = jnp.dot(x, w_msg).reshape(1, N).astype(jnp.bfloat16)   # message proj (MXU bf16)
    hroot = jnp.dot(x, w_root).reshape(N) + b                     # root proj + bias (f32)

    # Edge list stays in its natural lane-dense [2, E_pad] layout; pads carry id N.
    Et = _pick_edge_tile(N, E, edge_tile)
    num_tiles = max(1, pl.cdiv(E, Et))
    P = 2 if num_tiles >= 2 else 1        # megacore-parallel partial aggregates (v7x)
    T = pl.cdiv(num_tiles, P)
    E_pad = P * T * Et
    ei = jnp.pad(jnp.asarray(edge_index, jnp.int32),
                 ((0, 0), (0, E_pad - E)), constant_values=N)      # [2, E_pad]

    # ---- kernel 1: edge-tiled neighbor aggregation ---------------------------
    agg_cost = pl.CostEstimate(
        flops=4 * E_pad * N, transcendentals=0,
        bytes_accessed=4 * 2 * E_pad + 2 * N + 4 * P * N)
    partial_agg = pl.pallas_call(
        _graphconv_agg_kernel,
        out_shape=jax.ShapeDtypeStruct((P, N), jnp.float32),
        grid_spec=pltpu.PrefetchScalarGridSpec(
            num_scalar_prefetch=0,
            grid=(P, T),
            in_specs=[
                pl.BlockSpec((2, Et), lambda c, t: (0, c * T + t)),   # edge tiles
                pl.BlockSpec((1, N), lambda c, t: (0, 0)),            # hmsg, resident
            ],
            out_specs=pl.BlockSpec((1, N), lambda c, t: (c, 0)),      # per-slice accum
            scratch_shapes=[pltpu.VMEM((N, Et), jnp.int32)],          # cached node iota
        ),
        compiler_params=pltpu.CompilerParams(
            dimension_semantics=("parallel", "arbitrary"),
            vmem_limit_bytes=32 * 1024 * 1024),
        cost_estimate=agg_cost,
    )(ei, hmsg)

    # GraphConv finalize (tiny [N]-element epilogue) and top-k in the wrapper.
    score = jnp.tanh(jnp.sum(partial_agg, axis=0) + hroot)            # [N]
    # TODO(synk): top-k (a sort) has no Mosaic primitive; done with jax.lax.top_k.
    score_perm, perm = jax.lax.top_k(score, k)
    perm = perm.astype(jnp.int32)

    # ---- kernel 2a: X' via scalar-prefetch DMA row gather (x stays f32) ------
    x_out = pl.pallas_call(
        functools.partial(_gather_scale_kernel, multiplier=float(multiplier)),
        out_shape=jax.ShapeDtypeStruct((k, D), jnp.float32),
        grid_spec=pltpu.PrefetchScalarGridSpec(
            num_scalar_prefetch=1,
            grid=(k,),
            in_specs=[
                pl.BlockSpec((1, D), lambda i, perm_ref: (perm_ref[i], 0)),  # row gather
                pl.BlockSpec((1, 1), lambda i, perm_ref: (i, 0)),            # score[perm]
            ],
            out_specs=pl.BlockSpec((1, D), lambda i, perm_ref: (i, 0)),
        ),
        compiler_params=pltpu.CompilerParams(
            dimension_semantics=("arbitrary",)),
    )(perm, x, score_perm.reshape(k, 1))

    # ---- kernel 2b: filter_adj, gridded over lane-dense [2, Et] edge tiles ----
    K8 = _round_up(k, 8)
    perm_col = jnp.pad(perm, (0, K8 - k), constant_values=-1).reshape(K8, 1)
    new_ei = pl.pallas_call(
        _filter_adj_kernel,
        out_shape=jax.ShapeDtypeStruct((2, E_pad), jnp.int32),
        grid_spec=pltpu.PrefetchScalarGridSpec(
            num_scalar_prefetch=0,
            grid=(E_pad // Et,),
            in_specs=[
                pl.BlockSpec((K8, 1), lambda t: (0, 0)),               # perm, resident
                pl.BlockSpec((2, Et), lambda t: (0, t)),
            ],
            out_specs=pl.BlockSpec((2, Et), lambda t: (0, t)),
        ),
        compiler_params=pltpu.CompilerParams(
            dimension_semantics=("parallel",),
            vmem_limit_bytes=32 * 1024 * 1024),
    )(perm_col, ei)

    new_edge_index = new_ei[:, :E]
    edge_mask = new_edge_index[0] >= 0
    # TODO(synk): dynamic-shape compaction of kept edges (true filter_adj output)
    # cannot be expressed with static shapes; we return relabeled indices + mask.
    batch_perm = jnp.zeros((k,), jnp.int32)               # default single-graph batch
    return (x_out, new_edge_index, edge_mask, batch_perm, perm, score_perm, score)


# ---------------------------------------------------------------------------
# Pure numpy references
# ---------------------------------------------------------------------------
def _reference_score(x, edge_index, w_msg, w_root, b_root):
    x = np.asarray(x, np.float32)
    w_msg = np.asarray(w_msg, np.float32).reshape(-1, 1)
    w_root = np.asarray(w_root, np.float32).reshape(-1, 1)
    b = np.asarray(b_root, np.float32).reshape(())
    src = np.asarray(edge_index[0])
    tgt = np.asarray(edge_index[1])
    h = x @ w_msg
    agg = np.zeros_like(h)
    np.add.at(agg, tgt, h[src])
    return np.tanh((agg + x @ w_root + b).reshape(-1)).astype(np.float32)


def _reference_pool(x, score, edge_index, ratio, multiplier):
    x = np.asarray(x, np.float32)
    src = np.asarray(edge_index[0])
    tgt = np.asarray(edge_index[1])
    N = x.shape[0]
    k = int(math.ceil(ratio * N))
    perm = np.argsort(-score, kind="stable")[:k]
    x_out = x[perm] * score[perm][:, None] * multiplier
    mapping = -np.ones(N, dtype=np.int32)
    mapping[perm] = np.arange(k, dtype=np.int32)
    keep = (mapping[src] >= 0) & (mapping[tgt] >= 0)
    new_src = np.where(keep, mapping[src], -1)
    new_tgt = np.where(keep, mapping[tgt], -1)
    return x_out, np.stack([new_src, new_tgt]), keep, perm, score[perm]


if __name__ == "__main__":
    in_channels = 32
    num_nodes = 16
    num_edges = 40
    ratio = 0.5
    multiplier = 1.0

    key = jax.random.PRNGKey(0)
    kx, ks, kt, kw1, kw2, kb = jax.random.split(key, 6)
    x = jax.random.normal(kx, (num_nodes, in_channels), dtype=jnp.float32)
    src = jax.random.randint(ks, (num_edges,), 0, num_nodes, dtype=jnp.int32)
    tgt = jax.random.randint(kt, (num_edges,), 0, num_nodes, dtype=jnp.int32)
    edge_index = jnp.stack([src, tgt], axis=0)                    # [2, E]

    # GraphConv(in_channels, 1): message weight [D,1], root Linear weight [D,1] + bias.
    w_msg = jax.random.normal(kw1, (in_channels, 1), dtype=jnp.float32) * 0.1
    w_root = jax.random.normal(kw2, (in_channels, 1), dtype=jnp.float32) * 0.1
    b_root = jax.random.normal(kb, (1, 1), dtype=jnp.float32) * 0.1

    out = sag_pooling(x, edge_index, w_msg, w_root, b_root,
                      ratio=ratio, multiplier=multiplier)
    out = jax.block_until_ready(out)
    x_out, new_ei, edge_mask, batch_perm, perm, score_perm, score_full = out

    # 1) GraphConv projection score matches a pure-numpy reference (message
    #    projection is bf16-rounded in-kernel -> 1e-2 tolerance).
    ref_score = _reference_score(x, edge_index, w_msg, w_root, b_root)
    np.testing.assert_allclose(np.asarray(score_full), ref_score,
                               rtol=1e-2, atol=1e-2)

    # 2) top-k / gather / filter_adj exactly match a reference driven by the
    #    kernel's own scores (avoids flaky ordering on near-ties).
    kscore = np.asarray(score_full)
    ref_x, ref_ei, ref_keep, ref_perm, ref_sperm = _reference_pool(
        np.asarray(x), kscore, np.asarray(edge_index), ratio, multiplier)
    np.testing.assert_array_equal(np.asarray(perm), ref_perm)
    np.testing.assert_allclose(np.asarray(score_perm), ref_sperm,
                               rtol=1e-6, atol=1e-6)
    np.testing.assert_allclose(np.asarray(x_out), ref_x, rtol=1e-5, atol=1e-5)
    np.testing.assert_array_equal(np.asarray(new_ei), ref_ei)
    np.testing.assert_array_equal(np.asarray(edge_mask), ref_keep)
    assert np.all(np.asarray(batch_perm) == 0)
    print("KERNEL_OK")
</pallas_src>

<mosaic_0001>
module attributes {stable_mosaic.version = 11 : i64} {
  func.func @_graphconv_agg_kernel(%arg0: i32, %arg1: i32, %arg2: memref<2x128xi32, #tpu.memory_space<vmem>>, %arg3: memref<1x16xbf16, #tpu.memory_space<vmem>>, %arg4: memref<1x16xf32, #tpu.memory_space<vmem>>, %arg5: memref<16x128xi32, #tpu.memory_space<vmem>>) attributes {dimension_semantics = [#tpu.dimension_semantics<parallel>, #tpu.dimension_semantics<arbitrary>], iteration_bounds = array<i64: 1, 1>, scalar_prefetch = 0 : i64, scratch_operands = 1 : i64, tpu.core_type = #tpu.core_type<tc>, window_params = [{transform_indices = @transform_0, window_bounds = array<i64: 2, 128>}, {pipeline_mode = #tpu.pipeline_mode<synchronous>, transform_indices = @transform_1, window_bounds = array<i64: 1, 16>}, {transform_indices = @transform_2, window_bounds = array<i64: 1, 16>}]} {
    %c0_i32 = arith.constant 0 : i32
    %0 = arith.cmpi eq, %arg1, %c0_i32 : i32
    %1 = arith.extui %0 : i1 to i32
    %c0_i32_0 = arith.constant 0 : i32
    %2 = arith.cmpi ne, %1, %c0_i32_0 : i32
    scf.if %2 {
      %23 = tpu.iota {dimensions = array<i32: 0>} : vector<16x128xi32>
      %c0_12 = arith.constant 0 : index
      %c0_13 = arith.constant 0 : index
      %24 = vector.load %arg5[%c0_12, %c0_13] : memref<16x128xi32, #tpu.memory_space<vmem>>, vector<16x128xi32>
      tpu.vector_store %arg5[%c0_12, %c0_13], %23 {strides = array<i32>} : memref<16x128xi32, #tpu.memory_space<vmem>>, vector<16x128xi32>,
      %cst_14 = arith.constant 0.000000e+00 : f32
      %25 = vector.broadcast %cst_14 : f32 to vector<1x16xf32>
      %c0_15 = arith.constant 0 : index
      %c0_16 = arith.constant 0 : index
      %26 = vector.load %arg4[%c0_15, %c0_16] : memref<1x16xf32, #tpu.memory_space<vmem>>, vector<1x16xf32>
      tpu.vector_store %arg4[%c0_15, %c0_16], %25 {strides = array<i32>} : memref<1x16xf32, #tpu.memory_space<vmem>>, vector<1x16xf32>,
    } else {
    }
    %c0 = arith.constant 0 : index
    %c0_1 = arith.constant 0 : index
    %3 = vector.load %arg5[%c0, %c0_1] : memref<16x128xi32, #tpu.memory_space<vmem>>, vector<16x128xi32>
    %c0_2 = arith.constant 0 : index
    %c0_3 = arith.constant 0 : index
    %4 = vector.load %arg2[%c0_2, %c0_3] : memref<2x128xi32, #tpu.memory_space<vmem>>, vector<1x128xi32>
    %5 = vector.broadcast %4 : vector<1x128xi32> to vector<16x128xi32>
    %6 = arith.cmpi eq, %3, %5 : vector<16x128xi32>
    %7 = arith.extui %6 : vector<16x128xi1> to vector<16x128xi32>
    %8 = arith.sitofp %7 : vector<16x128xi32> to vector<16x128xf32>
    %9 = arith.truncf %8 : vector<16x128xf32> to vector<16x128xbf16>
    %c1 = arith.constant 1 : index
    %c0_4 = arith.constant 0 : index
    %10 = vector.load %arg2[%c1, %c0_4] : memref<2x128xi32, #tpu.memory_space<vmem>>, vector<1x128xi32>
    %11 = vector.broadcast %10 : vector<1x128xi32> to vector<16x128xi32>
    %12 = arith.cmpi eq, %3, %11 : vector<16x128xi32>
    %13 = arith.extui %12 : vector<16x128xi1> to vector<16x128xi32>
    %14 = arith.sitofp %13 : vector<16x128xi32> to vector<16x128xf32>
    %15 = arith.truncf %14 : vector<16x128xf32> to vector<16x128xbf16>
    %c0_5 = arith.constant 0 : index
    %c0_6 = arith.constant 0 : index
    %16 = vector.load %arg3[%c0_5, %c0_6] : memref<1x16xbf16, #tpu.memory_space<vmem>>, vector<1x16xbf16>
    %cst = arith.constant dense<0.000000e+00> : vector<1x128xf32>
    %17 = tpu.matmul %16, %9, %cst {dimension_numbers = #tpu.dot_dimension_numbers<[1], [0], [0], [1], [0, 0, 1, 1], [], []>} : vector<1x16xbf16>, vector<16x128xbf16>, vector<1x128xf32> -> vector<1x128xf32>
    %c0_7 = arith.constant 0 : index
    %c0_8 = arith.constant 0 : index
    %18 = vector.load %arg4[%c0_7, %c0_8] : memref<1x16xf32, #tpu.memory_space<vmem>>, vector<1x16xf32>
    %19 = arith.truncf %17 : vector<1x128xf32> to vector<1x128xbf16>
    %cst_9 = arith.constant dense<0.000000e+00> : vector<1x16xf32>
    %20 = tpu.matmul %19, %15, %cst_9 {dimension_numbers = #tpu.dot_dimension_numbers<[1], [1], [0], [0], [0, 0, 1, 0], [], []>} : vector<1x128xbf16>, vector<16x128xbf16>, vector<1x16xf32> -> vector<1x16xf32>
    %21 = arith.addf %18, %20 : vector<1x16xf32>
    %c0_10 = arith.constant 0 : index
    %c0_11 = arith.constant 0 : index
    %22 = vector.load %arg4[%c0_10, %c0_11] : memref<1x16xf32, #tpu.memory_space<vmem>>, vector<1x16xf32>
    tpu.vector_store %arg4[%c0_10, %c0_11], %21 {strides = array<i32>} : memref<1x16xf32, #tpu.memory_space<vmem>>, vector<1x16xf32>,
    return
  }
  func.func @transform_0(%arg0: i32, %arg1: i32) -> (i32, i32) {
    %c1_i32 = arith.constant 1 : i32
    %0 = arith.muli %arg0, %c1_i32 : i32
    %1 = arith.addi %0, %arg1 : i32
    %c0_i32 = arith.constant 0 : i32
    %c0_i32_0 = arith.constant 0 : i32
    return %c0_i32, %1 : i32, i32
  }
  func.func @transform_1(%arg0: i32, %arg1: i32) -> (i32, i32) {
    %c0_i32 = arith.constant 0 : i32
    %c0_i32_0 = arith.constant 0 : i32
    %c0_i32_1 = arith.constant 0 : i32
    return %c0_i32, %c0_i32_0 : i32, i32
  }
  func.func @transform_2(%arg0: i32, %arg1: i32) -> (i32, i32) {
    %c0_i32 = arith.constant 0 : i32
    %c0_i32_0 = arith.constant 0 : i32
    return %arg0, %c0_i32 : i32, i32
  }
}

</mosaic_0001>

<bundles_post_ra>
// kernel: tpu_custom_call.1
= control target key start
LH: loop header
LB: loop body
LE: loop exit
PB: predicated region body
PF: predicated region fallthrough
CT: control target
= control target key end

     0   :  { %7 = vsyncpa [#allocation4], 0  ;;  %s278_s0 = inlined_call_operand.hbm [shape: s32[2,128], index: 0, kind: input, shape index: {}]   ;;  %s279_s1 = inlined_call_operand.vmem [shape: bf16[1,16], index: 1, kind: input, shape index: {}]   ;;  %s280_s2 = inlined_call_operand.hbm [shape: f32[1,16], index: 2, kind: output, shape index: {}]  }
   0x1   :  { %8 = vsyncpa [#allocation5], 0  ;;  %s247_s9 = smov [#allocation3]  }
   0x2   :  { %s18_s10 = sshll.u32 %s247_s9, 4  ;;  %s19_s10 = int_to_ptr.vmem [resolvable:$true] %s18_s10 }
   0x3   :  { %s211_s11 = scalar_lea.vmem %s19_s10, 32  ;;  %p216_p1 = scmp.lt.s32.totalorder %s19_s10, %s19_s10 }
   0x4   :  { %p212_p0 = scmp.ne.s32.totalorder %s19_s10, %s211_s11  ;;  %p217_p2 = scmp.lt.s32.totalorder %s211_s11, %s211_s11 }
   0x6   :  { %p218_p3 = por %p217_p2, %p216_p1 }
   0x8   :  { %p219_p4 = pnand %p218_p3, %p212_p0 }
   0xa   :  { %222 = shalt.err (!%p219_p4)
}
   0xb   :  { %21 = dma.hbm_to_vmem [thread:$0]  %s278_s0, 32, %s19_s10, [#allocation4]  }
   0xc   :  { %243 = dma.done.wait [#allocation4], 32  }
   0xd   :  { %244 = vsyncadd [#allocation4], 4294967264  ;;  %vm38_vm0 = vcmask 122880   ;;  %v33_v0 = vlaneseq  ;;  %v248_v1 = vmov 0.0   ;;  %vm249_vm1 = vmmov 0   ;;  %s251_s15 = smov [#allocation6]  }
   0xe   :  { %39 = vst.msk [vmem:[#allocation6] sm:$0x1] %vm38_vm0, %v248_v1  ;;  %186 = vmatprep.subr.bf16.mxu0 %v248_v1  ;;  %192 = vmatprep.subr.bf16.mxu1 %v248_v1  ;;  %v171_v4 = vld [vmem:[#allocation3] ss:$0 sm:$0xff]  ;;  %v174_v5 = vld [vmem:[#allocation3 + $0x1] ss:$0 sm:$0xff] }
   0xf   :  { %v34_v2 = vshrl.u32 %v33_v0, 7  ;;  %188 = vmatprep.mubr.msk.bf16.mxu0 %vm249_vm1, %v248_v1  ;;  %194 = vmatprep.mubr.msk.bf16.mxu1 %vm249_vm1, %v248_v1  ;;  %v250_v6 = vmov 1.0|1.0   ;;  %v66_v7 = vld [vmem:[%s279_s1] sm:$0x1]  ;;  %vm67_vm7 = vcmask 130048  }
  0x10   :  { %s162_s16 = sshll.u32 %s251_s15, 4  ;;  %s163_s16 = int_to_ptr.vmem [resolvable:$true] %s162_s16 }
  0x11   :  { %v35_v3 = vadd.s32 8, %v34_v2  ;;  %vm47_vm2 = vcmp.eq.s32.totalorder %v34_v2, %v171_v4  ;;  %vm59_vm4 = vcmp.eq.s32.totalorder %v34_v2, %v174_v5  ;;  %s223_s1 = scalar_lea.vmem %s163_s16, 16  ;;  %s227_s17 = scalar_lea.vmem %s163_s16, 32 }
  0x12   :  { %p224_p5 = scmp.ne.s32.totalorder %s163_s16, %s223_s1  ;;  %p228_p6 = scmp.lt.s32.totalorder %s163_s16, %s163_s16 }
  0x13   :  { %vm48_vm3 = vcmp.eq.s32.totalorder %v35_v3, %v171_v4  ;;  %vm60_vm5 = vcmp.eq.s32.totalorder %v35_v3, %v174_v5  ;;  %p229_p7 = scmp.lt.s32.totalorder %s227_s17, %s223_s1 }
  0x14   :  { %vm177_vm6 = vmpackc.low %vm48_vm3, %vm47_vm2 }
  0x15   :  { %187 = vmatpush3.bf16.msk.msra.mxu0 %vm177_vm6, %v250_v6  ;;  %vm180_vm8 = vmpackc.low %vm60_vm5, %vm59_vm4  ;;  %v111_v13 = vld [vmem:[#allocation6] sm:$0x1]  ;;  %p230_p8 = por %p229_p7, %p228_p6 }
  0x16   :  { %193 = vmatpush3.bf16.xpose.msk.msra.mxu1 %vm180_vm8, %v250_v6 }
  0x17   :  { %p231_p9 = pnand %p230_p8, %p224_p5 }
  0x18   :  { %189 = vmatmul.mubr.msk.bf16.vlgmr.msra.gmra.mxu0 %vm67_vm7, %v66_v7 }
  0xd8   :  { %v105_v8 = vpop.f32.mrf.mxu0 }
  0xd9   :  { %v112_v9 = vpack.c.bf16 %v105_v8, %v105_v8 }
  0xda   :  { %v190_v10 = vpop.f32.mrf.mxu0 }
  0xdb   :  { %195 = vmatmul.mubr.bf16.vlgmr.msra.gmra.mxu1 %v112_v9 }
  0xdc   :  { %v108_v11 = vpop.f32.mrf.mxu0 }
  0xde   :  { %v191_v12 = vpop.f32.mrf.mxu0 }
 0x19b   :  { %v147_v14 = vpop.f32.mrf.mxu1 }
 0x19c   :  { %v153_v15 = vadd.f32 %v147_v14, %v111_v13 }
 0x19d   :  { %v196_v16 = vpop.f32.mrf.mxu1 }
 0x19e   :  { %155 = vst.msk [vmem:[#allocation6] sm:$0x1] %vm38_vm0, %v153_v15 }
 0x19f   :  { %v150_v17 = vpop.f32.mrf.mxu1 }
 0x1a0   :  { %234 = shalt.err (!%p231_p9)
}
 0x1a1   :  { %165 = dma.vmem_to_hbm [thread:$0]  %s163_s16, 16, %s280_s2, [#allocation5]   ;;  %v197_v18 = vpop.f32.mrf.mxu1 }
 0x1a2   :  { %245 = dma.done.wait [#allocation5], 16  }
 0x1a3   :  { %246 = vsyncadd [#allocation5], 4294967280 }
 0x1a4   :  { %169 = vsyncpa [#allocation4], 1 }
 0x1a5   :  { %170 = vsyncpa [#allocation5], 1 }

</bundles_post_ra>
